<compile_context>
chip_gen: v5e
topology: v5e:2x2
jax: 0.10.0
libtpu: 0.0.40
codegen_flags: <defaults>
</compile_context>

<pallas_src>
import functools

import jax
import jax.numpy as jnp
from jax import lax
from jax.experimental import pallas as pl
from jax.experimental.pallas import tpu as pltpu

SAMPLE_RATE = 128  # conf.sample_rate == self.length (small synthetic value)

# The (nk, tn, tn) Toeplitz band tiles stay resident in VMEM while below this budget
# (x2 double-buffering still leaves ample headroom under the 32 MiB scoped default,
# which holds on v5e/v6e/v7x); above it we stream one (tn, tn) band tile per K step.
_RESIDENT_TOE_BYTES = 8 * 1024 * 1024


def _impulse_kernel(decay_ref, wet_ref, noise_ref, imp_ref, *, sample_rate, length):
    """build_impulse + F.pad as a single 1-D pass (runs once, O(L) EUP work).

    decay_ref, wet_ref : (1, 1) f32 single-vreg operands
    noise_ref, imp_ref : (1, L) f32 (noise already zero-padded from `length` up to L)
    """
    L = imp_ref.shape[-1]

    # softplus/sigmoid written with plain exp/log/div (guaranteed Mosaic lowerings).
    # softplus(-decay): exact wherever the envelope is nonzero.
    sp = jnp.log(1.0 + jnp.exp(-decay_ref[...]))                 # (1, 1)
    k = sp * (500.0 / float(sample_rate))                        # (1, 1)
    sig_w = 1.0 / (1.0 + jnp.exp(-wet_ref[...]))                 # sigmoid(wet), (1, 1)

    lane = lax.broadcasted_iota(jnp.int32, (1, L), 1)
    env = jnp.exp(-(k * lane.astype(jnp.float32)))               # exponent <= 0: safe
    imp = noise_ref[...] * env * sig_w
    imp = jnp.where(lane == 0, 1.0, imp)                         # impulse[0] = 1
    imp_ref[...] = jnp.where(lane < length, imp, 0.0)            # zero-padded tail


def _conv_kernel(x_ref, toe_ref, out_ref, acc_ref, *, nk, resident, precision):
    """One (column tile j, band step k) step of the banded Toeplitz matmul.

    x_ref   : (B, tn)  columns of x for row block rb = max(j - (nk-1) + k, 0)
    toe_ref : (nk, tn, tn) resident band tiles, or (1, tn, tn) streamed tile k
    out_ref : (B, tn)  output columns of tile j (revisited across k)
    acc_ref : (B, tn)  f32 accumulator scratch
    """
    j = pl.program_id(0)
    k = pl.program_id(1)

    @pl.when(k == 0)
    def _init():
        acc_ref[...] = jnp.zeros_like(acc_ref)

    # Row block j-(nk-1)+k only exists (is not clamped below 0) when j+k >= nk-1;
    # clamped steps lie above row 0 of the band and are pure skips.
    @pl.when(j + k >= nk - 1)
    def _accumulate():
        tile = toe_ref[k] if resident else toe_ref[0]
        acc_ref[...] += jnp.dot(
            x_ref[...], tile,
            preferred_element_type=jnp.float32,
            precision=precision,
        )

    @pl.when(k == nk - 1)
    def _finalize():
        out_ref[...] = acc_ref[...].astype(out_ref.dtype)


def _pick_col_tile(L):
    # Lane-dense tile (multiple of 128), preferring 256-512, but keeping >= 2 column
    # tiles whenever possible so the v7x megacore can split the "parallel" axis.
    divisors = [c for c in (512, 384, 256, 128) if L % c == 0]
    multi = [c for c in divisors if L // c >= 2]
    return (multi or divisors)[0]


def reverb_forward(x, noise, decay, wet, *, sample_rate=None, tn=None,
                   precision=lax.Precision.DEFAULT):
    """x: (B, lenx) f32; noise: (length,) param; decay, wet: scalar params."""
    B, lenx = x.shape
    length = noise.shape[0]
    if sample_rate is None:
        sample_rate = length
    assert lenx >= length, "forward pads the impulse up to len(x)"

    # Zero-pad the time axis to a lane-aligned multiple of 128 (exact for a causal
    # convolution: the extra zero columns only feed outputs that are sliced off).
    L = ((lenx + 127) // 128) * 128
    if tn is None:
        tn = _pick_col_tile(L)
    assert L % tn == 0 and tn % 128 == 0
    num_tiles = L // tn
    # Row blocks intersecting the nonzero band of one column tile (capped: no column
    # tile can ever need more than num_tiles row blocks).
    nk = (length - 1 + tn - 1) // tn + 1 if length > 1 else 1
    nk = min(nk, num_tiles)

    # ---- kernel 1: build the zero-padded impulse row (all build_impulse math) -----
    noise_row = jnp.pad(noise.astype(jnp.float32), (0, L - length)).reshape(1, L)
    decay_arr = jnp.asarray(decay, jnp.float32).reshape(1, 1)
    wet_arr = jnp.asarray(wet, jnp.float32).reshape(1, 1)

    impulse = pl.pallas_call(
        functools.partial(_impulse_kernel, sample_rate=sample_rate, length=length),
        out_shape=jax.ShapeDtypeStruct((1, L), jnp.float32),
        grid=(1,),
        in_specs=[
            pl.BlockSpec((1, 1), lambda i: (0, 0)),   # decay
            pl.BlockSpec((1, 1), lambda i: (0, 0)),   # wet
            pl.BlockSpec((1, L), lambda i: (0, 0)),   # zero-padded noise row
        ],
        out_specs=pl.BlockSpec((1, L), lambda i: (0, 0)),
    )(decay_arr, wet_arr, noise_row)

    # ---- glue (layout only, no forward math): impulse row -> nk distinct band tiles.
    # T[r, c] = impulse[c - r] is constant along diagonals, so the (tn, tn) tile for
    # (row block rb, column block j) depends only on d = j - rb = nk - 1 - k.
    imp_row = impulse.reshape(L)
    d_off = (nk - 1 - jnp.arange(nk)) * tn                              # (nk,)
    lag = (d_off[:, None, None]
           + jnp.arange(tn)[None, None, :]                              # column offset
           - jnp.arange(tn)[None, :, None])                             # row offset
    valid = (lag >= 0) & (lag < L)
    toe_tiles = jnp.where(valid, imp_row[jnp.clip(lag, 0, L - 1)], 0.0)

    # ---- kernel 2: band-limited Toeplitz matmul ------------------------------------
    x_pad = x if L == lenx else jnp.pad(x, ((0, 0), (0, L - lenx)))
    resident = nk * tn * tn * 4 <= _RESIDENT_TOE_BYTES
    if resident:
        # Constant index map -> DMA'd once, stays resident across the whole grid.
        toe_spec = pl.BlockSpec((nk, tn, tn), lambda j, k: (0, 0, 0))
    else:
        # Very long impulses: stream one (tn, tn) band tile per K step instead.
        toe_spec = pl.BlockSpec((1, tn, tn), lambda j, k: (k, 0, 0))

    y = pl.pallas_call(
        functools.partial(_conv_kernel, nk=nk, resident=resident, precision=precision),
        out_shape=jax.ShapeDtypeStruct((B, L), x.dtype),
        grid=(num_tiles, nk),
        in_specs=[
            # x columns of the (clamped) row block for this band step.
            pl.BlockSpec((B, tn),
                         lambda j, k: (0, jnp.maximum(j - (nk - 1) + k, 0))),
            toe_spec,
        ],
        out_specs=pl.BlockSpec((B, tn), lambda j, k: (0, j)),
        scratch_shapes=[pltpu.VMEM((B, tn), jnp.float32)],
        compiler_params=pltpu.CompilerParams(
            dimension_semantics=("parallel", "arbitrary"),
            # Budget: 2 * nk*tn*tn*4 (<= 16 MiB by _RESIDENT_TOE_BYTES) + small x /
            # out / acc tiles — comfortably under the 32 MiB scoped default on
            # v5e / v6e / v7x (64 MiB physical on v7x).
            vmem_limit_bytes=32 * 1024 * 1024,
        ),
    )(x_pad, toe_tiles)

    return y if L == lenx else y[:, :lenx]


if __name__ == "__main__":
    key = jax.random.PRNGKey(0)
    k_noise, k_x = jax.random.split(key)

    sample_rate = SAMPLE_RATE          # == self.length
    B, lenx = 2, 256                   # x: (batch, time), lenx >= length

    # deterministic parameter init (matches nn.Module __init__ shapes)
    noise = jax.random.uniform(k_noise, (sample_rate,), jnp.float32) * 2.0 - 1.0
    decay = jnp.float32(5.0)           # initial_decay
    wet = jnp.float32(0.0)             # initial_wet

    x = jax.random.normal(k_x, (B, lenx), jnp.float32)

    # Fast path (DEFAULT MXU precision, per review) + exact-f32 verification path.
    y = jax.block_until_ready(
        reverb_forward(x, noise, decay, wet, sample_rate=sample_rate))
    y_exact = jax.block_until_ready(
        reverb_forward(x, noise, decay, wet, sample_rate=sample_rate,
                       precision=lax.Precision.HIGHEST))

    # pure-JAX reference (identical semantics to the PyTorch forward)
    t = jnp.arange(sample_rate, dtype=jnp.float32) / sample_rate
    env = jnp.exp(-jax.nn.softplus(-decay) * t * 500.0)
    impulse = noise * env * jax.nn.sigmoid(wet)
    impulse = impulse.at[0].set(1.0)
    impulse = jnp.pad(impulse, (0, lenx - sample_rate))
    y_ref = jax.vmap(lambda xb: jnp.convolve(xb, impulse)[:lenx])(x)

    err_exact = float(jnp.max(jnp.abs(y_exact - y_ref)))
    assert jnp.allclose(y_exact, y_ref, atol=1e-4, rtol=1e-4), \
        f"exact-precision path max abs err = {err_exact}"

    # DEFAULT precision = bf16 MXU passes -> ~1e-3 relative matmul error; a structural
    # bug (wrong lag / band / diagonal) would show up as O(1) errors instead.
    err_fast = float(jnp.max(jnp.abs(y - y_ref)))
    assert jnp.allclose(y, y_ref, atol=5e-2, rtol=5e-2), \
        f"default-precision path max abs err = {err_fast}"

    print("KERNEL_OK")
</pallas_src>

<mosaic_0001>
module attributes {stable_mosaic.version = 11 : i64} {
  func.func @_impulse_kernel(%arg0: i32, %arg1: memref<1x1xf32, #tpu.memory_space<vmem>>, %arg2: memref<1x1xf32, #tpu.memory_space<vmem>>, %arg3: memref<1x256xf32, #tpu.memory_space<vmem>>, %arg4: memref<1x256xf32, #tpu.memory_space<vmem>>) attributes {dimension_semantics = [#tpu.dimension_semantics<arbitrary>], iteration_bounds = array<i64: 1>, scalar_prefetch = 0 : i64, scratch_operands = 0 : i64, tpu.core_type = #tpu.core_type<tc>, window_params = [{pipeline_mode = #tpu.pipeline_mode<synchronous>, transform_indices = @transform_0, window_bounds = array<i64: 1, 1>}, {pipeline_mode = #tpu.pipeline_mode<synchronous>, transform_indices = @transform_1, window_bounds = array<i64: 1, 1>}, {pipeline_mode = #tpu.pipeline_mode<synchronous>, transform_indices = @transform_2, window_bounds = array<i64: 1, 256>}, {pipeline_mode = #tpu.pipeline_mode<synchronous>, transform_indices = @transform_3, window_bounds = array<i64: 1, 256>}]} {
    %c0 = arith.constant 0 : index
    %c0_0 = arith.constant 0 : index
    %0 = vector.load %arg1[%c0, %c0_0] : memref<1x1xf32, #tpu.memory_space<vmem>>, vector<1x1xf32>
    %cst = arith.constant 0.000000e+00 : f32
    %1 = vector.broadcast %cst : f32 to vector<1x1xf32>
    %2 = arith.subf %1, %0 : vector<1x1xf32>
    %3 = math.exp %2 : vector<1x1xf32>
    %cst_1 = arith.constant 1.000000e+00 : f32
    %4 = vector.broadcast %cst_1 : f32 to vector<1x1xf32>
    %5 = arith.addf %4, %3 : vector<1x1xf32>
    %6 = math.log %5 : vector<1x1xf32>
    %cst_2 = arith.constant 3.906250e+00 : f32
    %7 = vector.broadcast %cst_2 : f32 to vector<1x1xf32>
    %8 = arith.mulf %6, %7 : vector<1x1xf32>
    %c0_3 = arith.constant 0 : index
    %c0_4 = arith.constant 0 : index
    %9 = vector.load %arg2[%c0_3, %c0_4] : memref<1x1xf32, #tpu.memory_space<vmem>>, vector<1x1xf32>
    %cst_5 = arith.constant 0.000000e+00 : f32
    %10 = vector.broadcast %cst_5 : f32 to vector<1x1xf32>
    %11 = arith.subf %10, %9 : vector<1x1xf32>
    %12 = math.exp %11 : vector<1x1xf32>
    %cst_6 = arith.constant 1.000000e+00 : f32
    %13 = vector.broadcast %cst_6 : f32 to vector<1x1xf32>
    %14 = arith.addf %13, %12 : vector<1x1xf32>
    %cst_7 = arith.constant 1.000000e+00 : f32
    %15 = vector.broadcast %cst_7 : f32 to vector<1x1xf32>
    %16 = arith.divf %15, %14 : vector<1x1xf32>
    %17 = tpu.iota {dimensions = array<i32: 1>} : vector<1x256xi32>
    %18 = arith.sitofp %17 : vector<1x256xi32> to vector<1x256xf32>
    %19 = vector.broadcast %8 : vector<1x1xf32> to vector<1x256xf32>
    %20 = arith.mulf %19, %18 : vector<1x256xf32>
    %cst_8 = arith.constant 0.000000e+00 : f32
    %21 = vector.broadcast %cst_8 : f32 to vector<1x256xf32>
    %22 = arith.subf %21, %20 : vector<1x256xf32>
    %23 = math.exp %22 : vector<1x256xf32>
    %c0_9 = arith.constant 0 : index
    %c0_10 = arith.constant 0 : index
    %24 = vector.load %arg3[%c0_9, %c0_10] : memref<1x256xf32, #tpu.memory_space<vmem>>, vector<1x256xf32>
    %25 = arith.mulf %24, %23 : vector<1x256xf32>
    %26 = vector.broadcast %16 : vector<1x1xf32> to vector<1x256xf32>
    %27 = arith.mulf %25, %26 : vector<1x256xf32>
    %c0_i32 = arith.constant 0 : i32
    %28 = vector.broadcast %c0_i32 : i32 to vector<1x256xi32>
    %29 = arith.cmpi eq, %17, %28 : vector<1x256xi32>
    %cst_11 = arith.constant 1.000000e+00 : f32
    %30 = vector.broadcast %cst_11 : f32 to vector<1x256xf32>
    %31 = arith.select %29, %30, %27 : vector<1x256xi1>, vector<1x256xf32>
    %c128_i32 = arith.constant 128 : i32
    %32 = vector.broadcast %c128_i32 : i32 to vector<1x256xi32>
    %33 = arith.cmpi slt, %17, %32 : vector<1x256xi32>
    %cst_12 = arith.constant 0.000000e+00 : f32
    %34 = vector.broadcast %cst_12 : f32 to vector<1x256xf32>
    %35 = arith.select %33, %31, %34 : vector<1x256xi1>, vector<1x256xf32>
    %c0_13 = arith.constant 0 : index
    %c0_14 = arith.constant 0 : index
    %36 = vector.load %arg4[%c0_13, %c0_14] : memref<1x256xf32, #tpu.memory_space<vmem>>, vector<1x256xf32>
    tpu.vector_store %arg4[%c0_13, %c0_14], %35 {strides = array<i32>} : memref<1x256xf32, #tpu.memory_space<vmem>>, vector<1x256xf32>,
    return
  }
  func.func @transform_0(%arg0: i32) -> (i32, i32) {
    %c0_i32 = arith.constant 0 : i32
    %c0_i32_0 = arith.constant 0 : i32
    %c0_i32_1 = arith.constant 0 : i32
    return %c0_i32, %c0_i32_0 : i32, i32
  }
  func.func @transform_1(%arg0: i32) -> (i32, i32) {
    %c0_i32 = arith.constant 0 : i32
    %c0_i32_0 = arith.constant 0 : i32
    %c0_i32_1 = arith.constant 0 : i32
    return %c0_i32, %c0_i32_0 : i32, i32
  }
  func.func @transform_2(%arg0: i32) -> (i32, i32) {
    %c0_i32 = arith.constant 0 : i32
    %c0_i32_0 = arith.constant 0 : i32
    %c0_i32_1 = arith.constant 0 : i32
    return %c0_i32, %c0_i32_0 : i32, i32
  }
  func.func @transform_3(%arg0: i32) -> (i32, i32) {
    %c0_i32 = arith.constant 0 : i32
    %c0_i32_0 = arith.constant 0 : i32
    %c0_i32_1 = arith.constant 0 : i32
    return %c0_i32, %c0_i32_0 : i32, i32
  }
}

</mosaic_0001>

<bundles_post_ra>
// kernel: tpu_custom_call.1
= control target key start
LH: loop header
LB: loop body
LE: loop exit
PB: predicated region body
PF: predicated region fallthrough
CT: control target
= control target key end

     0   :  { %s199_s0 = inlined_call_operand.<no memory space> [shape: f32[1,1], index: 0, kind: input, shape index: {}]   ;;  %s200_s2 = inlined_call_operand.vmem [shape: f32[1,256], index: 2, kind: input, shape index: {}]   ;;  %s201_s3 = inlined_call_operand.hbm [shape: f32[1,256], index: 3, kind: output, shape index: {}]   ;;  %s202_s1 = inlined_call_operand.<no memory space> [shape: f32[1,1], index: 1, kind: input, shape index: {}]  }
   0x1   :  { %v8_v0 = vstv %s199_s0  ;;  %v10_v1 = vstv %s202_s1 }
   0x2   :  { %9 = vst [vmem:[#allocation2] sm:$0x1] %v8_v0 }
   0x3   :  { %11 = vst [vmem:[#allocation3] sm:$0x1] %v10_v1 }
   0x4   :  { %v162_v4 = vmov 0  }
   0x5   :  { %123 = vset.pattern.permute.xlu0 %v162_v4 }
   0x9   :  { %v19_v2 = vld [vmem:[#allocation2] sm:$0x1] }
   0xa   :  { %v27_v3 = vld [vmem:[#allocation3] sm:$0x1]  ;;  %v20_v5 = vsub.f32 0.0, %v19_v2 }
   0xb   :  { %v28_v6 = vsub.f32 0.0, %v27_v3 }
   0xc   :  { %12 = vsyncpa [#allocation5], 0  ;;  %v21_v7 = vmul.f32 1.442695, %v20_v5  ;;  %v47_v26 = vlaneseq  ;;  %vm70_vm4 = vcmask 1040384   ;;  %v163_v48 = vmov 0.0  }
   0xd   :  { %v29_v8 = vmul.f32 1.442695, %v28_v6  ;;  %v66_v41 = vld [vmem:[%s200_s2] sm:$0x3]  ;;  %v96_v49 = vrot.slane %v163_v48, 7  ;;  %s164_s16 = smov [#allocation4]  }
   0xe   :  { %124 = vpow2.f32 %v21_v7  ;;  %v48_v27 = vand.u32 127, %v47_v26  ;;  %s109_s17 = sshll.u32 %s164_s16, 4  ;;  %s111_s20 = sshll.u32 %s201_s3, 4  ;;  %vm101_vm6 = vcmp.lt.s32.totalorder %v47_v26, 256  ;;  %s110_s17 = int_to_ptr.vmem [resolvable:$true] %s109_s17  ;;  %s112_s20 = int_to_ptr.hbm [resolvable:$true] %s111_s20 }
   0xf   :  { %126 = vpow2.f32 %v29_v8 }
  0x10   :  { %v49_v28 = vadd.s32 128, %v48_v27  ;;  %v50_v29 = vcvt.s32.f32 %v48_v27  ;;  %vm81_vm5 = vcmp.eq.s32.totalorder %v48_v27, 0 }
  0x12   :  { %v51_v30 = vcvt.s32.f32 %v49_v28 }
  0x14   :  { %v125_v9 = vpop.eup %124 }
  0x15   :  { %v127_v10 = vpop.eup %126  ;;  %v23_v11 = vadd.f32 1.0, %v125_v9 }
  0x16   :  { %v31_v12 = vadd.f32 1.0, %v127_v10 }
  0x17   :  { %128 = vlog2.f32 %v23_v11 }
  0x18   :  { %130 = vrcp.f32 %v31_v12  ;;  %v43_v18 = vand.u32 2147483648, %v31_v12  ;;  %vm37_vm0 = vweird.f32 %v31_v12  ;;  %v41_v20 = vand.u32 2147483647, %v31_v12 }
  0x1a   :  { %v44_v22 = vor.u32 1.1754944e-38, %v43_v18  ;;  %vm42_vm3 = vcmp.eq.f32.partialorder %v41_v20, 8.507059e+37 }
  0x1d   :  { %v129_v13 = vpop.eup %128 }
  0x1e   :  { %v131_v14 = vpop.eup %130  ;;  %v25_v15 = vmul.f32 0.6931472, %v129_v13 }
  0x1f   :  { %v33_v16 = vmul.f32 %v131_v14, %v31_v12  ;;  %vm38_vm1 = vweird.f32 %v131_v14 }
  0x20   :  { %v26_v17 = vmul.f32 3.90625, %v25_v15  ;;  %vm39_vm2 = vmor %vm37_vm0, %vm38_vm1 }
  0x21   :  { %v34_v19 = vsub.f32 1.0, %v33_v16 }
  0x22   :  { %54 = vperm.xlu0 %123, %v26_v17  }
  0x23   :  { %v35_v21 = vmul.f32 %v131_v14, %v34_v19 }
  0x25   :  { %v36_v23 = vadd.f32 %v131_v14, %v35_v21 }
  0x27   :  { %v40_v24 = vsel %vm39_vm2, %v131_v14, %v36_v23 }
  0x28   :  { %v45_v25 = vsel %vm42_vm3, %v44_v22, %v40_v24 }
  0x2a   :  { %76 = vperm.xlu0 %123, %v45_v25  }
  0x94   :  { %v55_v31 = vpop.permute.xlu0 %54 }
  0x95   :  { %v57_v32 = vperm.slane %v55_v31, 0 }
  0x97   :  { %v58_v33 = vmul.f32 %v57_v32, %v50_v29  ;;  %v59_v34 = vmul.f32 %v57_v32, %v51_v30 }
  0x99   :  { %v60_v35 = vsub.f32 0.0, %v58_v33  ;;  %v61_v36 = vsub.f32 0.0, %v59_v34 }
  0x9b   :  { %v64_v37 = vmul.f32 1.442695, %v61_v36  ;;  %v62_v38 = vmul.f32 1.442695, %v60_v35 }
  0x9c   :  { %v77_v42 = vpop.permute.xlu0 %76 }
  0x9d   :  { %132 = vpow2.f32 %v64_v37  ;;  %v79_v46 = vperm.slane %v77_v42, 0 }
  0x9e   :  { %134 = vpow2.f32 %v62_v38 }
  0xa3   :  { %v133_v39 = vpop.eup %132 }
  0xa4   :  { %v69_v40 = vrot.slane %v133_v39, 7  ;;  %v135_v43 = vpop.eup %134 }
  0xa6   :  { %v71_v44 = vsel %vm70_vm4, %v135_v43, %v69_v40 }
  0xa7   :  { %v73_v45 = vmul.f32 %v71_v44, %v66_v41 }
  0xa9   :  { %v80_v47 = vmul.f32 %v79_v46, %v73_v45 }
  0xab   :  { %v84_v50 = vperm.slane %v80_v47, 0 }
  0xad   :  { %v88_v51 = vsel %vm81_vm5, 1.0, %v84_v50 }
  0xae   :  { %v97_v52 = vsel %vm70_vm4, %v88_v51, %v96_v49 }
  0xaf   :  { %103 = vst.msk [vmem:[#allocation4] sm:$0x3] %vm101_vm6, %v97_v52 }
  0xb0   :  { %114 = dma.vmem_to_hbm [thread:$0]  %s110_s17, 32, %s112_s20, [#allocation5]  }
  0xb1   :  { %160 = dma.done.wait [#allocation5], 32  }
  0xb2   :  { %161 = vsyncadd [#allocation5], 4294967264 }
  0xb3   :  { %119 = vsyncpa [#allocation5], 1 }

</bundles_post_ra>
